<compile_context>
chip_gen: v6e
topology: v6e:2x2x1
jax: 0.10.0
libtpu: 0.0.40
codegen_flags: <defaults>
</compile_context>

<pallas_src>
import numpy as np

import jax
import jax.numpy as jnp
from jax.experimental import pallas as pl
from jax.experimental.pallas import tpu as pltpu

LAYER_DIMS = [2, 4, 16, 64, 256]
_D_IN = LAYER_DIMS[0]
_OUT_DIMS = tuple(LAYER_DIMS[1:])          # (4, 16, 64, 256)
_TOTAL_OUT = sum(_OUT_DIMS)                # 340


def _po2_kernel(x_ref, h1_ref, h2_ref, h3_ref, h4_ref):
    """One batch tile: per output, one lane-iota compare + one VPU select,
    then one contiguous store.  Bit-exact 'repeat' (no matmul, no rounding)."""
    x = x_ref[...]                         # (TB, 2)
    x0 = x[:, 0:1]                         # (TB, 1) -> broadcast over lanes
    x1 = x[:, 1:2]                         # (TB, 1)
    for ref, width in zip((h1_ref, h2_ref, h3_ref, h4_ref), _OUT_DIMS):
        # out[b, j] = x1[b] if j >= width//2 else x0[b]
        hi = jax.lax.broadcasted_iota(jnp.int32, (1, width), 1) >= (width // 2)
        ref[...] = jnp.where(hi, x1, x0).astype(ref.dtype)


def _tpu_vmem_bytes() -> int:
    try:
        info = pltpu.get_tpu_info()
        return int(getattr(info, "vmem_capacity_bytes", 64 << 20))
    except Exception:
        return 64 << 20                    # conservative default (v7x-sized)


def _default_batch_tile(B: int, out_dtype=jnp.float32) -> int:
    """~1-2 MiB of output per grid step (already ~HBM roofline), and for large
    batches aim for >= ~8 grid steps so the pipeline overlaps and both v7x
    TensorCores get work.  Row multiple matches (8,128)/(16,128) tiling."""
    row_mult = 16 if jnp.dtype(out_dtype).itemsize < 4 else 8
    cap = 1024
    if B <= cap:
        return B                           # block == full batch dim: always legal
    tb = min(cap, -(-B // 8))              # ceil(B / 8)
    tb = max(row_mult, (tb // row_mult) * row_mult)
    return tb


def power_of_2_forward(x: jax.Array, batch_tile: int | None = None,
                       out_dtype=jnp.float32):
    """Mirrors PowerOf2Layers.forward: returns (final, [x, h1, h2, h3, h4]).

    out_dtype=jnp.bfloat16 roughly halves HBM write traffic (~2x on this
    write-bound kernel) but drops the bit-exact 'repeat' guarantee.
    """
    B, d_in = x.shape
    assert d_in == _D_IN, f"expected input dim {_D_IN}, got {d_in}"

    tb = batch_tile if batch_tile is not None else _default_batch_tile(B, out_dtype)
    tb = min(tb, B)
    grid = (pl.cdiv(B, tb),)               # Pallas masks the ragged last block

    out_itemsize = jnp.dtype(out_dtype).itemsize
    in_itemsize = jnp.dtype(x.dtype).itemsize
    # Per-step VMEM: input block (2 lanes -> padded to 128) + output blocks
    # (4/16/64 pad to 128 lanes each, 256 stays), x2 for double-buffering.
    vmem_need = tb * 2 * (128 * in_itemsize + (3 * 128 + 256) * out_itemsize)
    vmem_limit = int(min(_tpu_vmem_bytes(), max(vmem_need + (4 << 20), 16 << 20)))

    cost = pl.CostEstimate(
        flops=B * _TOTAL_OUT,              # one select per output element
        transcendentals=0,
        bytes_accessed=B * (_D_IN * in_itemsize + _TOTAL_OUT * out_itemsize),
    )

    out_shape = tuple(jax.ShapeDtypeStruct((B, w), out_dtype) for w in _OUT_DIMS)
    out_specs = tuple(pl.BlockSpec((tb, w), lambda i: (i, 0)) for w in _OUT_DIMS)

    h1, h2, h3, h4 = pl.pallas_call(
        _po2_kernel,
        out_shape=out_shape,
        grid=grid,
        in_specs=[pl.BlockSpec((tb, _D_IN), lambda i: (i, 0))],
        out_specs=out_specs,
        compiler_params=pltpu.CompilerParams(
            dimension_semantics=("parallel",),
            vmem_limit_bytes=vmem_limit,
        ),
        cost_estimate=cost,
    )(x)

    layer_outputs = [x, h1, h2, h3, h4]
    return h4, layer_outputs


def _reference_forward(x: np.ndarray):
    """Pure-numpy reference matching the PyTorch repeat/expand semantics."""
    outs = [x]
    cur = x
    for i in range(len(LAYER_DIMS) - 1):
        ratio = LAYER_DIMS[i + 1] // LAYER_DIMS[i]
        cur = np.repeat(cur, ratio, axis=1)
        outs.append(cur)
    return cur, outs


def _check(x: jax.Array, batch_tile: int | None = None):
    final, intermediates = power_of_2_forward(x, batch_tile=batch_tile)
    final = jax.block_until_ready(final)
    intermediates = [jax.block_until_ready(t) for t in intermediates]

    ref_final, ref_inter = _reference_forward(np.asarray(x))
    assert final.shape == (x.shape[0], LAYER_DIMS[-1])
    np.testing.assert_allclose(np.asarray(final), ref_final, rtol=0, atol=0)
    for got, want in zip(intermediates, ref_inter):
        assert got.shape == want.shape
        np.testing.assert_allclose(np.asarray(got), want, rtol=0, atol=0)


if __name__ == "__main__":
    key = jax.random.PRNGKey(0)

    # Small single-block case.
    x_small = jax.random.normal(key, (16, _D_IN), dtype=jnp.float32)
    _check(x_small)

    # Multi-block grid with a ragged last tile (exercises pipelining + masking).
    key2 = jax.random.fold_in(key, 1)
    x_ragged = jax.random.normal(key2, (20, _D_IN), dtype=jnp.float32)
    _check(x_ragged, batch_tile=8)

    # Moderate batch with the default tile heuristic (multi-step parallel grid).
    key3 = jax.random.fold_in(key, 2)
    x_big = jax.random.normal(key3, (2048, _D_IN), dtype=jnp.float32)
    _check(x_big)

    print("KERNEL_OK")
</pallas_src>

<mosaic_0001>
module attributes {stable_mosaic.version = 11 : i64} {
  func.func @_po2_kernel(%arg0: i32, %arg1: memref<16x2xf32, #tpu.memory_space<vmem>>, %arg2: memref<16x4xf32, #tpu.memory_space<vmem>>, %arg3: memref<16x16xf32, #tpu.memory_space<vmem>>, %arg4: memref<16x64xf32, #tpu.memory_space<vmem>>, %arg5: memref<16x256xf32, #tpu.memory_space<vmem>>) attributes {dimension_semantics = [#tpu.dimension_semantics<parallel>], iteration_bounds = array<i64: 1>, scalar_prefetch = 0 : i64, scratch_operands = 0 : i64, tpu.core_type = #tpu.core_type<tc>, window_params = [{transform_indices = @transform_0, window_bounds = array<i64: 16, 2>}, {transform_indices = @transform_1, window_bounds = array<i64: 16, 4>}, {transform_indices = @transform_2, window_bounds = array<i64: 16, 16>}, {transform_indices = @transform_3, window_bounds = array<i64: 16, 64>}, {transform_indices = @transform_4, window_bounds = array<i64: 16, 256>}]} {
    %c0 = arith.constant 0 : index
    %c0_0 = arith.constant 0 : index
    %0 = vector.load %arg1[%c0, %c0_0] : memref<16x2xf32, #tpu.memory_space<vmem>>, vector<16x2xf32>
    %1 = vector.extract_strided_slice %0 {offsets = [0, 0], sizes = [16, 1], strides = [1, 1]} : vector<16x2xf32> to vector<16x1xf32>
    %2 = vector.extract_strided_slice %0 {offsets = [0, 1], sizes = [16, 1], strides = [1, 1]} : vector<16x2xf32> to vector<16x1xf32>
    %3 = tpu.iota {dimensions = array<i32: 1>} : vector<1x4xi32>
    %c2_i32 = arith.constant 2 : i32
    %4 = vector.broadcast %c2_i32 : i32 to vector<1x4xi32>
    %5 = arith.cmpi sge, %3, %4 : vector<1x4xi32>
    %6 = vector.shape_cast %5 : vector<1x4xi1> to vector<1x4xi1>
    %7 = vector.broadcast %6 : vector<1x4xi1> to vector<16x4xi1>
    %8 = vector.shape_cast %2 : vector<16x1xf32> to vector<16x1xf32>
    %9 = vector.broadcast %8 : vector<16x1xf32> to vector<16x4xf32>
    %10 = vector.shape_cast %1 : vector<16x1xf32> to vector<16x1xf32>
    %11 = vector.broadcast %10 : vector<16x1xf32> to vector<16x4xf32>
    %12 = arith.select %7, %9, %11 : vector<16x4xi1>, vector<16x4xf32>
    %c0_1 = arith.constant 0 : index
    %c0_2 = arith.constant 0 : index
    %13 = vector.load %arg2[%c0_1, %c0_2] : memref<16x4xf32, #tpu.memory_space<vmem>>, vector<16x4xf32>
    tpu.vector_store %arg2[%c0_1, %c0_2], %12 {strides = array<i32>} : memref<16x4xf32, #tpu.memory_space<vmem>>, vector<16x4xf32>,
    %14 = tpu.iota {dimensions = array<i32: 1>} : vector<1x16xi32>
    %c8_i32 = arith.constant 8 : i32
    %15 = vector.broadcast %c8_i32 : i32 to vector<1x16xi32>
    %16 = arith.cmpi sge, %14, %15 : vector<1x16xi32>
    %17 = vector.shape_cast %16 : vector<1x16xi1> to vector<1x16xi1>
    %18 = vector.broadcast %17 : vector<1x16xi1> to vector<16x16xi1>
    %19 = vector.shape_cast %2 : vector<16x1xf32> to vector<16x1xf32>
    %20 = vector.broadcast %19 : vector<16x1xf32> to vector<16x16xf32>
    %21 = vector.shape_cast %1 : vector<16x1xf32> to vector<16x1xf32>
    %22 = vector.broadcast %21 : vector<16x1xf32> to vector<16x16xf32>
    %23 = arith.select %18, %20, %22 : vector<16x16xi1>, vector<16x16xf32>
    %c0_3 = arith.constant 0 : index
    %c0_4 = arith.constant 0 : index
    %24 = vector.load %arg3[%c0_3, %c0_4] : memref<16x16xf32, #tpu.memory_space<vmem>>, vector<16x16xf32>
    tpu.vector_store %arg3[%c0_3, %c0_4], %23 {strides = array<i32>} : memref<16x16xf32, #tpu.memory_space<vmem>>, vector<16x16xf32>,
    %25 = tpu.iota {dimensions = array<i32: 1>} : vector<1x64xi32>
    %c32_i32 = arith.constant 32 : i32
    %26 = vector.broadcast %c32_i32 : i32 to vector<1x64xi32>
    %27 = arith.cmpi sge, %25, %26 : vector<1x64xi32>
    %28 = vector.shape_cast %27 : vector<1x64xi1> to vector<1x64xi1>
    %29 = vector.broadcast %28 : vector<1x64xi1> to vector<16x64xi1>
    %30 = vector.shape_cast %2 : vector<16x1xf32> to vector<16x1xf32>
    %31 = vector.broadcast %30 : vector<16x1xf32> to vector<16x64xf32>
    %32 = vector.shape_cast %1 : vector<16x1xf32> to vector<16x1xf32>
    %33 = vector.broadcast %32 : vector<16x1xf32> to vector<16x64xf32>
    %34 = arith.select %29, %31, %33 : vector<16x64xi1>, vector<16x64xf32>
    %c0_5 = arith.constant 0 : index
    %c0_6 = arith.constant 0 : index
    %35 = vector.load %arg4[%c0_5, %c0_6] : memref<16x64xf32, #tpu.memory_space<vmem>>, vector<16x64xf32>
    tpu.vector_store %arg4[%c0_5, %c0_6], %34 {strides = array<i32>} : memref<16x64xf32, #tpu.memory_space<vmem>>, vector<16x64xf32>,
    %36 = tpu.iota {dimensions = array<i32: 1>} : vector<1x256xi32>
    %c128_i32 = arith.constant 128 : i32
    %37 = vector.broadcast %c128_i32 : i32 to vector<1x256xi32>
    %38 = arith.cmpi sge, %36, %37 : vector<1x256xi32>
    %39 = vector.shape_cast %38 : vector<1x256xi1> to vector<1x256xi1>
    %40 = vector.broadcast %39 : vector<1x256xi1> to vector<16x256xi1>
    %41 = vector.shape_cast %2 : vector<16x1xf32> to vector<16x1xf32>
    %42 = vector.broadcast %41 : vector<16x1xf32> to vector<16x256xf32>
    %43 = vector.shape_cast %1 : vector<16x1xf32> to vector<16x1xf32>
    %44 = vector.broadcast %43 : vector<16x1xf32> to vector<16x256xf32>
    %45 = arith.select %40, %42, %44 : vector<16x256xi1>, vector<16x256xf32>
    %c0_7 = arith.constant 0 : index
    %c0_8 = arith.constant 0 : index
    %46 = vector.load %arg5[%c0_7, %c0_8] : memref<16x256xf32, #tpu.memory_space<vmem>>, vector<16x256xf32>
    tpu.vector_store %arg5[%c0_7, %c0_8], %45 {strides = array<i32>} : memref<16x256xf32, #tpu.memory_space<vmem>>, vector<16x256xf32>,
    return
  }
  func.func @transform_0(%arg0: i32) -> (i32, i32) {
    %c0_i32 = arith.constant 0 : i32
    %c0_i32_0 = arith.constant 0 : i32
    return %arg0, %c0_i32 : i32, i32
  }
  func.func @transform_1(%arg0: i32) -> (i32, i32) {
    %c0_i32 = arith.constant 0 : i32
    %c0_i32_0 = arith.constant 0 : i32
    return %arg0, %c0_i32 : i32, i32
  }
  func.func @transform_2(%arg0: i32) -> (i32, i32) {
    %c0_i32 = arith.constant 0 : i32
    %c0_i32_0 = arith.constant 0 : i32
    return %arg0, %c0_i32 : i32, i32
  }
  func.func @transform_3(%arg0: i32) -> (i32, i32) {
    %c0_i32 = arith.constant 0 : i32
    %c0_i32_0 = arith.constant 0 : i32
    return %arg0, %c0_i32 : i32, i32
  }
  func.func @transform_4(%arg0: i32) -> (i32, i32) {
    %c0_i32 = arith.constant 0 : i32
    %c0_i32_0 = arith.constant 0 : i32
    return %arg0, %c0_i32 : i32, i32
  }
}

</mosaic_0001>

<bundles_post_ra>
// kernel: tpu_custom_call.1
= control target key start
LH: loop header
LB: loop body
LE: loop exit
PB: predicated region body
PF: predicated region fallthrough
CT: control target
= control target key end

     0   :  { %10 = vsyncpa [#allocation3], 0  ;;  %v202_v1 = vmov 0   ;;  %v203_v2 = vmov 1   ;;  %s276_s0 = inlined_call_operand.vmem [shape: f32[16,2], index: 0, kind: input, shape index: {}]   ;;  %s277_s1 = inlined_call_operand.vmem [shape: f32[16,4], index: 1, kind: output, shape index: {0}]   ;;  %s278_s2 = inlined_call_operand.hbm [shape: f32[16,16], index: 2, kind: output, shape index: {1}]   ;;  %s279_s3 = inlined_call_operand.hbm [shape: f32[16,64], index: 3, kind: output, shape index: {2}]   ;;  %s280_s4 = inlined_call_operand.hbm [shape: f32[16,256], index: 4, kind: output, shape index: {3}]  }
   0x1   :  { %v14_v0 = vld [vmem:[%s276_s0] sm:$0xff]  ;;  %136 = vset.pattern.permute.xlu1 %v202_v1  ;;  %135 = vset.pattern.permute.xlu0 %v203_v2 }
   0x2   :  { %11 = vsyncpa [#allocation5], 0  ;;  %32 = vperm.xlu1 %136, %v14_v0   ;;  %23 = vperm.xlu0 %135, %v14_v0   ;;  %v15_v3 = vld [vmem:[%s276_s0 + $0x8] sm:$0xff]  ;;  %v16_v4 = vlaneseq  ;;  %vm41_vm3 = vcmask 31744   ;;  %vm49_vm4 = vcmask 130048   ;;  %vm57_vm5 = vcmask 523264  }
   0x3   :  { %s204_s0 = smov [#allocation4]   ;;  %s205_s22 = smov [#allocation2]  }
   0x4   :  { %v17_v5 = vand.u32 127, %v16_v4  ;;  %s94_s19 = sshll.u32 %s204_s0, 4  ;;  %s82_s23 = sshll.u32 %s205_s22, 4  ;;  %s95_s19 = int_to_ptr.vmem [resolvable:$true] %s94_s19  ;;  %s83_s23 = int_to_ptr.vmem [resolvable:$true] %s82_s23 }
   0x5   :  { %s206_s24 = smov [#allocation6]   ;;  %s138_s28 = scalar_lea.vmem %s95_s19, 256 }
   0x6   :  { %36 = vperm.xlu1 %136, %v15_v3   ;;  %28 = vperm.xlu0 %135, %v15_v3   ;;  %vm18_vm0 = vcmp.ge.s32.totalorder %v17_v5, 2  ;;  %vm44_vm1 = vcmp.ge.s32.totalorder %v17_v5, 8  ;;  %vm52_vm2 = vcmp.ge.s32.totalorder %v17_v5, 32  ;;  %s106_s25 = sshll.u32 %s206_s24, 4  ;;  %p139_p0 = scmp.ne.s32.totalorder %s95_s19, %s138_s28  ;;  %s260_s25 = int_to_ptr.vmem [resolvable:$true] %s106_s25 }
   0x7   :  { %p143_p1 = scmp.lt.s32.totalorder %s95_s19, %s95_s19  ;;  %p144_p2 = scmp.lt.s32.totalorder %s138_s28, %s138_s28 }
   0x9   :  { %p145_p3 = por %p144_p2, %p143_p1 }
   0xa   :  { %137 = vset.pattern.permute.xlu0 %v202_v1 }
   0xb   :  { %p146_p4 = pnand %p145_p3, %p139_p0 }
  0x7d   :  { %v33_v6 = vpop.permute.xlu1 %32  ;;  %v24_v7 = vpop.permute.xlu0 %23 }
  0x7e   :  { %71 = vst [vmem:[#allocation6] sm:$0xff] %v33_v6  ;;  %v39_v8 = vsel %vm18_vm0, %v24_v7, %v33_v6  ;;  %v47_v9 = vsel %vm44_vm1, %v24_v7, %v33_v6  ;;  %v55_v10 = vsel %vm52_vm2, %v24_v7, %v33_v6  ;;  %72 = vst [vmem:[#allocation6 + $0x8] sm:$0xff] %v24_v7 }
  0x7f   :  { %42 = vst.msk [vmem:[%s277_s1] sm:$0xff] %vm41_vm3, %v39_v8 }
  0x80   :  { %58 = vst.msk [vmem:[#allocation4] sm:$0xff] %vm57_vm5, %v55_v10 }
  0x81   :  { %50 = vst.msk [vmem:[#allocation2] sm:$0xff] %vm49_vm4, %v47_v9  ;;  %v37_v11 = vpop.permute.xlu1 %36  ;;  %v29_v12 = vpop.permute.xlu0 %28 }
  0x82   :  { %73 = vst [vmem:[#allocation6 + $0x10] sm:$0xff] %v37_v11  ;;  %v40_v13 = vsel %vm18_vm0, %v29_v12, %v37_v11  ;;  %v48_v14 = vsel %vm44_vm1, %v29_v12, %v37_v11  ;;  %v56_v15 = vsel %vm52_vm2, %v29_v12, %v37_v11  ;;  %74 = vst [vmem:[#allocation6 + $0x18] sm:$0xff] %v29_v12 }
  0x83   :  { %43 = vst.msk [vmem:[%s277_s1 + $0x8] sm:$0xff] %vm41_vm3, %v40_v13 }
  0x84   :  { %51 = vst.msk [vmem:[#allocation2 + $0x8] sm:$0xff] %vm49_vm4, %v48_v14 }
  0x85   :  { %59 = vst.msk [vmem:[#allocation4 + $0x8] sm:$0xff] %vm57_vm5, %v56_v15 }
  0x86   :  { %149 = shalt.err (!%p146_p4)
}
  0x87   :  { %s207_s29 = smov 128   ;;  %s208_s30 = smov 8  }
  0x88   :  { %100 = dma.vmem_to_hbm [thread:$0]  %s95_s19, 256, %s279_s3, [#allocation5], %s207_s29, %s207_s29, %s208_s30  }
  0x89   :  { %s158_s1 = scalar_lea.vmem %s83_s23, 256  ;;  %p163_p6 = scmp.lt.s32.totalorder %s83_s23, %s83_s23 }
  0x8a   :  { %p159_p5 = scmp.ne.s32.totalorder %s83_s23, %s158_s1  ;;  %p164_p7 = scmp.lt.s32.totalorder %s158_s1, %s158_s1 }
  0x8c   :  { %p165_p8 = por %p164_p7, %p163_p6 }
  0x8e   :  { %p166_p9 = pnand %p165_p8, %p159_p5 }
  0x90   :  { %169 = shalt.err (!%p166_p9)
}
  0x91   :  { %88 = dma.vmem_to_hbm [thread:$0]  %s83_s23, 256, %s278_s2, [#allocation3], %s207_s29, %s207_s29, %s208_s30  }
  0x92   :  { %s178_s9 = scalar_lea.vmem %s260_s25, 512  ;;  %p183_p11 = scmp.lt.s32.totalorder %s260_s25, %s260_s25 }
  0x93   :  { %p179_p10 = scmp.ne.s32.totalorder %s260_s25, %s178_s9  ;;  %p184_p12 = scmp.lt.s32.totalorder %s178_s9, %s178_s9 }
  0x95   :  { %p185_p13 = por %p184_p12, %p183_p11 }
  0x97   :  { %p186_p0 = pnand %p185_p13, %p179_p10 }
  0x99   :  { %189 = shalt.err (!%p186_p0)
}
  0x9a   :  { %s209_s3 = smov 256   ;;  %s210_s10 = smov 16  }
  0x9b   :  { %112 = dma.vmem_to_hbm [thread:$0]  %s260_s25, 512, %s280_s4, [#allocation5], %s209_s3, %s209_s3, %s210_s10  }
  0x9c   :  { %198 = dma.done.wait [#allocation3], 256  }
  0x9d   :  { %199 = vsyncadd [#allocation3], 4294967040 }
  0x9e   :  { %200 = dma.done.wait [#allocation5], 768  }
  0x9f   :  { %201 = vsyncadd [#allocation5], 4294966528 }
  0xa0   :  { %124 = vsyncpa [#allocation3], 1 }
  0xa1   :  { %125 = vsyncpa [#allocation5], 1 }

</bundles_post_ra>
